<compile_context>
chip_gen: v5e
topology: v5e:2x2
jax: 0.10.0
libtpu: 0.0.40
codegen_flags: <defaults>
</compile_context>

<pallas_src>
import functools

import jax
import jax.numpy as jnp
import numpy as np
from jax.experimental import pallas as pl
from jax.experimental.pallas import tpu as pltpu


def _round_up(x, m):
    return ((x + m - 1) // m) * m


def _num_tensorcores_per_chip():
    """2 for megacore-style chips (v7x / v4 / v5p), else 1; conservative fallback."""
    try:
        kind = jax.devices()[0].device_kind.lower()
    except Exception:
        return 1
    if "v7" in kind or "v4" in kind or "v5p" in kind:
        return 2
    return 1


def _support_sets_kernel(mask_ref, z_ref, sup_ref, alpha_ref, gram_ref,
                         out_ref, s_acc_ref, wsum_ref,
                         *, chunk, dim, n_sets, gamma):
    """One (batch-tile, dipole-chunk) grid step.

    Exact rewrite of the reference:
      w_j  = alpha_j * exp(-gamma * (|z|^2 + |s_j|^2 - 2 z.s_j))
      grad = -2 * ( (sum_j w_j) * z  -  sum_j w_j * s_j )
    |s_j|^2 of the mixed vector s_j = sum_k m_k sv_{k,j} is m @ G_j @ m with
    G_j[k,l] = <sv_{k,j}, sv_{l,j}> (exact for arbitrary soft masks).
    """
    c = pl.program_id(1)

    @pl.when(c == 0)
    def _init():
        s_acc_ref[...] = jnp.zeros_like(s_acc_ref)
        wsum_ref[...] = jnp.zeros_like(wsum_ref)

    zz = z_ref[...].astype(jnp.float32)                          # (tb, D)
    m32 = mask_ref[...].astype(jnp.float32)                      # (tb, K)
    # MXU operand in the table dtype (bf16 tables -> bf16 matmul, f32 accum).
    # NOTE: for bf16 tables a soft mask is rounded to bf16 here (exact for
    # one-hot masks); cast the table up instead if full soft-mask precision
    # matters.  All elementwise work below stays in f32 (v5e has no bf16 VPU).
    mt = m32.astype(sup_ref.dtype)

    znorm = jnp.sum(zz * zz, axis=1, keepdims=True)              # (tb, 1)

    # One wide MXU matmul selects this chunk's mixed support vectors for the
    # whole batch tile; alpha / Gram matmuls are tiny and ride along.
    ssb = jnp.dot(mt, sup_ref[...],
                  preferred_element_type=jnp.float32)            # (tb, chunk*D)
    ab = jnp.dot(m32, alpha_ref[...],
                 preferred_element_type=jnp.float32)             # (tb, chunk)
    mg = jnp.dot(m32, gram_ref[...],
                 preferred_element_type=jnp.float32)             # (tb, chunk*K)

    s_acc = jnp.zeros_like(zz)                                   # (tb, D)
    wsum = jnp.zeros_like(znorm)                                 # (tb, 1)
    # Static unroll over the (small, VMEM-budgeted) dipole chunk; every slice
    # is lane-aligned because D % 128 == 0.
    # TODO(synk): for very large chunks, stage ssb in a VMEM scratch and use
    # lax.fori_loop(unroll=True) over ref slices to bound live ranges further.
    for j in range(chunk):
        s_j = ssb[:, j * dim:(j + 1) * dim]                      # (tb, D)
        zs = jnp.sum(zz * s_j, axis=1, keepdims=True)            # (tb, 1)
        sn = jnp.sum(m32 * mg[:, j * n_sets:(j + 1) * n_sets],
                     axis=1, keepdims=True)                      # (tb, 1) = m G_j m
        w = ab[:, j:j + 1] * jnp.exp(-gamma * (znorm + sn - 2.0 * zs))
        wsum = wsum + w
        s_acc = s_acc + w * s_j
    s_acc_ref[...] += s_acc
    wsum_ref[...] += wsum

    @pl.when(c == pl.num_programs(1) - 1)
    def _finalize():
        # grad_f = -2 * (wsum*z - S); the factor 2 cancels under L2 norm, only
        # the sign survives.  rsqrt runs on the EUP; the tiny floor returns 0
        # (reference gives NaN) for exactly-zero gradients, e.g. padded rows.
        acc = wsum_ref[...] * zz - s_acc_ref[...]
        norm_sq = jnp.sum(acc * acc, axis=1, keepdims=True)
        inv_norm = jax.lax.rsqrt(jnp.maximum(norm_sq, 1e-30))
        out_ref[...] = (-acc * inv_norm).astype(out_ref.dtype)


def support_sets_forward(support_sets_mask, z, SUPPORT_SETS, ALPHAS, gamma,
                         *, block_bs=None, dipole_chunk=None,
                         vmem_budget_bytes=12 * 1024 * 1024):
    """Pallas forward pass of SupportSets (learn_gammas=False path)."""
    bs, K = support_sets_mask.shape
    bs_z, D = z.shape
    assert bs == bs_z
    two_n = ALPHAS.shape[1]
    assert SUPPORT_SETS.shape == (K, two_n * D)

    tab_dtype = SUPPORT_SETS.dtype
    tab_bytes = jnp.dtype(tab_dtype).itemsize
    D_pad = _round_up(D, 128)            # lane-dense slices & unmasked stores
    num_tc = _num_tensorcores_per_chip()

    # ---- batch tiling --------------------------------------------------------
    # Cap at 128 rows: zz + S + one (tb,128) f32 dipole slice stays ~48 vregs,
    # so the unrolled dipole loop does not spill.  Single-TC chips (v5e/v6e)
    # get one big tile (no forced multi-step grid); v7x gets an even number of
    # batch tiles so neither TensorCore idles.  Awkward batch sizes are
    # zero-padded instead of shrinking the tile (no divisor search).
    if block_bs is None:
        cap = 128
        if num_tc >= 2 and bs > 8:
            block_bs = min(cap, _round_up(-(-bs // 2), 8))
        else:
            block_bs = min(cap, _round_up(bs, 8))
        n_bt = -(-bs // block_bs)
        if num_tc >= 2 and n_bt > 1 and (n_bt % 2):
            n_bt += 1                                   # even steps on megacore
        block_bs = max(8, _round_up(-(-bs // n_bt), 8))  # rebalance -> less padding
    else:
        block_bs = max(8, _round_up(block_bs, 8))
        n_bt = -(-bs // block_bs)
    bs_pad = n_bt * block_bs

    # ---- dipole chunking from an explicit VMEM budget ------------------------
    # fixed      : mask/z/out tiles (double-buffered) + f32 accumulator scratch
    # per_dipole : support slab (2 buffers) + its (tb, D) ssb column + tiny
    #              alpha / Gram slabs
    fixed = (2 * (block_bs * K * 4 + 2 * block_bs * D_pad * 4)
             + block_bs * D_pad * 4 + block_bs * 4
             + (1 << 20))                                # compiler slack
    per_dipole = (2 * K * D_pad * tab_bytes
                  + block_bs * D_pad * 4
                  + 2 * K * 4 + 2 * K * K * 4)
    if dipole_chunk is None:
        dipole_chunk = int((vmem_budget_bytes - fixed) // per_dipole)
        dipole_chunk = max(1, min(two_n, 32, dipole_chunk))   # 32 caps the unroll
    else:
        dipole_chunk = max(1, min(two_n, int(dipole_chunk)))
    n_chunks = -(-two_n // dipole_chunk)
    two_n_pad = n_chunks * dipole_chunk

    vmem_est = fixed + dipole_chunk * per_dipole
    vmem_limit = int(min(max(2 * vmem_est, 32 << 20), 48 << 20))

    # ---- table layout: chunk-major slabs, padded dipoles have alpha == 0 -----
    sup3 = SUPPORT_SETS.reshape(K, two_n, D)
    alph = ALPHAS.astype(jnp.float32)
    if D_pad != D:
        sup3 = jnp.pad(sup3, ((0, 0), (0, 0), (0, D_pad - D)))
    if two_n_pad != two_n:
        sup3 = jnp.pad(sup3, ((0, 0), (0, two_n_pad - two_n), (0, 0)))
        alph = jnp.pad(alph, ((0, 0), (0, two_n_pad - two_n)))
    sup3f = sup3.astype(jnp.float32)
    gram = jnp.einsum('kjd,ljd->kjl', sup3f, sup3f)             # (K, 2Npad, K)

    sup_c = sup3.reshape(K, n_chunks, dipole_chunk * D_pad).transpose(1, 0, 2)
    alph_c = alph.reshape(K, n_chunks, dipole_chunk).transpose(1, 0, 2)
    gram_c = (gram.reshape(K, n_chunks, dipole_chunk, K)
                  .transpose(1, 0, 2, 3)
                  .reshape(n_chunks, K, dipole_chunk * K)).astype(jnp.float32)

    # ---- zero-pad batch / latent dim (exact: padded rows/lanes contribute 0) -
    mask_p, z_p = support_sets_mask, z
    if bs_pad != bs:
        mask_p = jnp.pad(mask_p, ((0, bs_pad - bs), (0, 0)))
        z_p = jnp.pad(z_p, ((0, bs_pad - bs), (0, 0)))
    if D_pad != D:
        z_p = jnp.pad(z_p, ((0, 0), (0, D_pad - D)))

    kernel = functools.partial(_support_sets_kernel, chunk=dipole_chunk,
                               dim=D_pad, n_sets=K, gamma=float(gamma))

    out_pad = pl.pallas_call(
        kernel,
        out_shape=jax.ShapeDtypeStruct((bs_pad, D_pad), z.dtype),
        grid_spec=pltpu.PrefetchScalarGridSpec(
            num_scalar_prefetch=0,
            grid=(n_bt, n_chunks),
            in_specs=[
                pl.BlockSpec((block_bs, K), lambda i, c: (i, 0)),      # mask tile
                pl.BlockSpec((block_bs, D_pad), lambda i, c: (i, 0)),  # z tile
                # TODO(synk): when n_chunks == 1 these table streams are
                # grid-constant and could be single-buffered
                # (pipeline_mode=pl.Buffered(1)) to halve their VMEM.
                pl.BlockSpec((None, K, dipole_chunk * D_pad),
                             lambda i, c: (c, 0, 0)),                  # support slab
                pl.BlockSpec((None, K, dipole_chunk),
                             lambda i, c: (c, 0, 0)),                  # alpha slab
                pl.BlockSpec((None, K, dipole_chunk * K),
                             lambda i, c: (c, 0, 0)),                  # Gram slab
            ],
            out_specs=pl.BlockSpec((block_bs, D_pad), lambda i, c: (i, 0)),
            scratch_shapes=[
                pltpu.VMEM((block_bs, D_pad), jnp.float32),   # sum_j w_j * s_j
                pltpu.VMEM((block_bs, 1), jnp.float32),       # sum_j w_j
            ],
        ),
        compiler_params=pltpu.CompilerParams(
            dimension_semantics=("parallel", "arbitrary"),
            vmem_limit_bytes=vmem_limit),
    )(mask_p, z_p, sup_c, alph_c, gram_c)

    if bs_pad != bs or D_pad != D:
        out_pad = out_pad[:bs, :D]
    return out_pad


def init_support_sets_params(key, num_support_sets, num_support_dipoles,
                             support_vectors_dim):
    """Deterministic re-implementation of SupportSets.__init__ parameter setup."""
    K, N, D = num_support_sets, num_support_dipoles, support_vectors_dim
    r_min, r_max = 1.0, 4.0
    radii = np.arange(r_min, r_max, (r_max - r_min) / K).astype(np.float32)  # (K,)

    sv = np.asarray(jax.random.normal(key, (K, N, D)), dtype=np.float32)
    sup = np.zeros((K, 2 * N, D), dtype=np.float32)
    sup[:, 0::2, :] = sv
    sup[:, 1::2, :] = -sv
    sup = radii[:, None, None] * sup / np.linalg.norm(sup, axis=2, keepdims=True)
    SUPPORT_SETS = jnp.asarray(sup.reshape(K, 2 * N * D))                 # (K, 2N*D)

    ALPHAS = jnp.asarray(np.tile(np.array([1.0, -1.0], dtype=np.float32),
                                 (K, N)))                                 # (K, 2N)
    return SUPPORT_SETS, ALPHAS


def support_sets_reference(mask, z, SUPPORT_SETS, ALPHAS, gamma, N, D):
    """Pure-JAX reference mirroring the PyTorch forward (learn_gammas=False)."""
    bs = z.shape[0]
    ssb = (mask @ SUPPORT_SETS).reshape(bs, 2 * N, D)
    ab = (mask @ ALPHAS)[:, :, None]
    diff = z[:, None, :] - ssb
    sq = jnp.sum(diff * diff, axis=2, keepdims=True)
    grad_f = -2.0 * jnp.sum(ab * jnp.exp(-gamma * sq) * diff, axis=1)
    return grad_f / jnp.linalg.norm(grad_f, axis=1, keepdims=True)


if __name__ == "__main__":
    # Small, module-consistent shapes.  D is a multiple of 128 so the kernel's
    # elementwise region and output stores are lane-dense.
    num_support_sets = 4        # K
    num_support_dipoles = 2     # N  -> 2N = 4
    support_vectors_dim = 128   # D  (latent z_dim)
    bs = 16
    gamma = 1.0 / support_vectors_dim   # default: inverse latent dimensionality

    key = jax.random.PRNGKey(0)
    k_params, k_mask, k_z = jax.random.split(key, 3)

    SUPPORT_SETS, ALPHAS = init_support_sets_params(
        k_params, num_support_sets, num_support_dipoles, support_vectors_dim)

    # one-hot support-set selection per batch element
    idx = jax.random.randint(k_mask, (bs,), 0, num_support_sets)
    support_sets_mask = jax.nn.one_hot(idx, num_support_sets, dtype=jnp.float32)
    z = jax.random.normal(k_z, (bs, support_vectors_dim), dtype=jnp.float32)

    out = support_sets_forward(support_sets_mask, z, SUPPORT_SETS, ALPHAS, gamma)
    out = jax.block_until_ready(out)

    ref = support_sets_reference(support_sets_mask, z, SUPPORT_SETS, ALPHAS,
                                 gamma, num_support_dipoles, support_vectors_dim)
    np.testing.assert_allclose(np.asarray(out), np.asarray(ref),
                               rtol=1e-5, atol=1e-5)
    print("KERNEL_OK")
</pallas_src>

<mosaic_0001>
module attributes {stable_mosaic.version = 11 : i64} {
  func.func @_support_sets_kernel(%arg0: i32, %arg1: i32, %arg2: memref<16x4xf32, #tpu.memory_space<vmem>>, %arg3: memref<16x128xf32, #tpu.memory_space<vmem>>, %arg4: memref<1x4x512xf32, #tpu.memory_space<vmem>>, %arg5: memref<1x4x4xf32, #tpu.memory_space<vmem>>, %arg6: memref<1x4x16xf32, #tpu.memory_space<vmem>>, %arg7: memref<16x128xf32, #tpu.memory_space<vmem>>, %arg8: memref<16x128xf32, #tpu.memory_space<vmem>>, %arg9: memref<16x1xf32, #tpu.memory_space<vmem>>) attributes {dimension_semantics = [#tpu.dimension_semantics<parallel>, #tpu.dimension_semantics<arbitrary>], iteration_bounds = array<i64: 1, 1>, scalar_prefetch = 0 : i64, scratch_operands = 2 : i64, tpu.core_type = #tpu.core_type<tc>, window_params = [{transform_indices = @transform_0, window_bounds = array<i64: 16, 4>}, {transform_indices = @transform_1, window_bounds = array<i64: 16, 128>}, {transform_indices = @transform_2, window_bounds = array<i64: 1, 4, 512>}, {transform_indices = @transform_3, window_bounds = array<i64: 1, 4, 4>}, {transform_indices = @transform_4, window_bounds = array<i64: 1, 4, 16>}, {transform_indices = @transform_5, window_bounds = array<i64: 16, 128>}]} {
    %c0_i32 = arith.constant 0 : i32
    %0 = arith.cmpi eq, %arg1, %c0_i32 : i32
    %1 = arith.extui %0 : i1 to i32
    %c0_i32_0 = arith.constant 0 : i32
    %2 = arith.cmpi ne, %1, %c0_i32_0 : i32
    scf.if %2 {
      %cst_44 = arith.constant 0.000000e+00 : f32
      %112 = vector.broadcast %cst_44 : f32 to vector<16x128xf32>
      %c0_45 = arith.constant 0 : index
      %c0_46 = arith.constant 0 : index
      %113 = vector.load %arg8[%c0_45, %c0_46] : memref<16x128xf32, #tpu.memory_space<vmem>>, vector<16x128xf32>
      tpu.vector_store %arg8[%c0_45, %c0_46], %112 {strides = array<i32>} : memref<16x128xf32, #tpu.memory_space<vmem>>, vector<16x128xf32>,
      %cst_47 = arith.constant 0.000000e+00 : f32
      %114 = vector.broadcast %cst_47 : f32 to vector<16x1xf32>
      %c0_48 = arith.constant 0 : index
      %c0_49 = arith.constant 0 : index
      %115 = vector.load %arg9[%c0_48, %c0_49] : memref<16x1xf32, #tpu.memory_space<vmem>>, vector<16x1xf32>
      tpu.vector_store %arg9[%c0_48, %c0_49], %114 {strides = array<i32>} : memref<16x1xf32, #tpu.memory_space<vmem>>, vector<16x1xf32>,
    } else {
    }
    %c0 = arith.constant 0 : index
    %c0_1 = arith.constant 0 : index
    %3 = vector.load %arg3[%c0, %c0_1] : memref<16x128xf32, #tpu.memory_space<vmem>>, vector<16x128xf32>
    %c0_2 = arith.constant 0 : index
    %c0_3 = arith.constant 0 : index
    %4 = vector.load %arg2[%c0_2, %c0_3] : memref<16x4xf32, #tpu.memory_space<vmem>>, vector<16x4xf32>
    %5 = arith.mulf %3, %3 : vector<16x128xf32>
    %cst = arith.constant dense<0.000000e+00> : vector<16xf32>
    %6 = vector.multi_reduction <add>, %5, %cst [1] : vector<16x128xf32> to vector<16xf32>
    %7 = vector.shape_cast %6 : vector<16xf32> to vector<16x1xf32>
    %c0_4 = arith.constant 0 : index
    %c0_5 = arith.constant 0 : index
    %c0_6 = arith.constant 0 : index
    %8 = vector.load %arg4[%c0_4, %c0_5, %c0_6] : memref<1x4x512xf32, #tpu.memory_space<vmem>>, vector<1x4x512xf32>
    %9 = vector.shape_cast %8 : vector<1x4x512xf32> to vector<4x512xf32>
    %cst_7 = arith.constant dense<0.000000e+00> : vector<16x512xf32>
    %10 = tpu.matmul %4, %9, %cst_7 {dimension_numbers = #tpu.dot_dimension_numbers<[1], [0], [0], [1], [0, 0, 1, 1], [], []>} : vector<16x4xf32>, vector<4x512xf32>, vector<16x512xf32> -> vector<16x512xf32>
    %c0_8 = arith.constant 0 : index
    %c0_9 = arith.constant 0 : index
    %c0_10 = arith.constant 0 : index
    %11 = vector.load %arg5[%c0_8, %c0_9, %c0_10] : memref<1x4x4xf32, #tpu.memory_space<vmem>>, vector<1x4x4xf32>
    %12 = vector.shape_cast %11 : vector<1x4x4xf32> to vector<4x4xf32>
    %cst_11 = arith.constant dense<0.000000e+00> : vector<16x4xf32>
    %13 = tpu.matmul %4, %12, %cst_11 {dimension_numbers = #tpu.dot_dimension_numbers<[1], [0], [0], [1], [0, 0, 1, 1], [], []>} : vector<16x4xf32>, vector<4x4xf32>, vector<16x4xf32> -> vector<16x4xf32>
    %c0_12 = arith.constant 0 : index
    %c0_13 = arith.constant 0 : index
    %c0_14 = arith.constant 0 : index
    %14 = vector.load %arg6[%c0_12, %c0_13, %c0_14] : memref<1x4x16xf32, #tpu.memory_space<vmem>>, vector<1x4x16xf32>
    %15 = vector.shape_cast %14 : vector<1x4x16xf32> to vector<4x16xf32>
    %cst_15 = arith.constant dense<0.000000e+00> : vector<16x16xf32>
    %16 = tpu.matmul %4, %15, %cst_15 {dimension_numbers = #tpu.dot_dimension_numbers<[1], [0], [0], [1], [0, 0, 1, 1], [], []>} : vector<16x4xf32>, vector<4x16xf32>, vector<16x16xf32> -> vector<16x16xf32>
    %cst_16 = arith.constant 0.000000e+00 : f32
    %17 = vector.broadcast %cst_16 : f32 to vector<16x128xf32>
    %cst_17 = arith.constant 0.000000e+00 : f32
    %18 = vector.broadcast %cst_17 : f32 to vector<16x1xf32>
    %19 = vector.extract_strided_slice %10 {offsets = [0, 0], sizes = [16, 128], strides = [1, 1]} : vector<16x512xf32> to vector<16x128xf32>
    %20 = arith.mulf %3, %19 : vector<16x128xf32>
    %cst_18 = arith.constant dense<0.000000e+00> : vector<16xf32>
    %21 = vector.multi_reduction <add>, %20, %cst_18 [1] : vector<16x128xf32> to vector<16xf32>
    %22 = vector.shape_cast %21 : vector<16xf32> to vector<16x1xf32>
    %23 = vector.extract_strided_slice %16 {offsets = [0, 0], sizes = [16, 4], strides = [1, 1]} : vector<16x16xf32> to vector<16x4xf32>
    %24 = arith.mulf %4, %23 : vector<16x4xf32>
    %cst_19 = arith.constant dense<0.000000e+00> : vector<16xf32>
    %25 = vector.multi_reduction <add>, %24, %cst_19 [1] : vector<16x4xf32> to vector<16xf32>
    %26 = vector.shape_cast %25 : vector<16xf32> to vector<16x1xf32>
    %27 = vector.extract_strided_slice %13 {offsets = [0, 0], sizes = [16, 1], strides = [1, 1]} : vector<16x4xf32> to vector<16x1xf32>
    %28 = arith.addf %7, %26 : vector<16x1xf32>
    %cst_20 = arith.constant 2.000000e+00 : f32
    %29 = vector.broadcast %cst_20 : f32 to vector<16x1xf32>
    %30 = arith.mulf %29, %22 : vector<16x1xf32>
    %31 = arith.subf %28, %30 : vector<16x1xf32>
    %cst_21 = arith.constant -7.812500e-03 : f32
    %32 = vector.broadcast %cst_21 : f32 to vector<16x1xf32>
    %33 = arith.mulf %32, %31 : vector<16x1xf32>
    %34 = math.exp %33 : vector<16x1xf32>
    %35 = arith.mulf %27, %34 : vector<16x1xf32>
    %36 = arith.addf %18, %35 : vector<16x1xf32>
    %37 = vector.broadcast %35 : vector<16x1xf32> to vector<16x128xf32>
    %38 = arith.mulf %37, %19 : vector<16x128xf32>
    %39 = arith.addf %17, %38 : vector<16x128xf32>
    %40 = vector.extract_strided_slice %10 {offsets = [0, 128], sizes = [16, 128], strides = [1, 1]} : vector<16x512xf32> to vector<16x128xf32>
    %41 = arith.mulf %3, %40 : vector<16x128xf32>
    %cst_22 = arith.constant dense<0.000000e+00> : vector<16xf32>
    %42 = vector.multi_reduction <add>, %41, %cst_22 [1] : vector<16x128xf32> to vector<16xf32>
    %43 = vector.shape_cast %42 : vector<16xf32> to vector<16x1xf32>
    %44 = vector.extract_strided_slice %16 {offsets = [0, 4], sizes = [16, 4], strides = [1, 1]} : vector<16x16xf32> to vector<16x4xf32>
    %45 = arith.mulf %4, %44 : vector<16x4xf32>
    %cst_23 = arith.constant dense<0.000000e+00> : vector<16xf32>
    %46 = vector.multi_reduction <add>, %45, %cst_23 [1] : vector<16x4xf32> to vector<16xf32>
    %47 = vector.shape_cast %46 : vector<16xf32> to vector<16x1xf32>
    %48 = vector.extract_strided_slice %13 {offsets = [0, 1], sizes = [16, 1], strides = [1, 1]} : vector<16x4xf32> to vector<16x1xf32>
    %49 = arith.addf %7, %47 : vector<16x1xf32>
    %cst_24 = arith.constant 2.000000e+00 : f32
    %50 = vector.broadcast %cst_24 : f32 to vector<16x1xf32>
    %51 = arith.mulf %50, %43 : vector<16x1xf32>
    %52 = arith.subf %49, %51 : vector<16x1xf32>
    %cst_25 = arith.constant -7.812500e-03 : f32
    %53 = vector.broadcast %cst_25 : f32 to vector<16x1xf32>
    %54 = arith.mulf %53, %52 : vector<16x1xf32>
    %55 = math.exp %54 : vector<16x1xf32>
    %56 = arith.mulf %48, %55 : vector<16x1xf32>
    %57 = arith.addf %36, %56 : vector<16x1xf32>
    %58 = vector.broadcast %56 : vector<16x1xf32> to vector<16x128xf32>
    %59 = arith.mulf %58, %40 : vector<16x128xf32>
    %60 = arith.addf %39, %59 : vector<16x128xf32>
    %61 = vector.extract_strided_slice %10 {offsets = [0, 256], sizes = [16, 128], strides = [1, 1]} : vector<16x512xf32> to vector<16x128xf32>
    %62 = arith.mulf %3, %61 : vector<16x128xf32>
    %cst_26 = arith.constant dense<0.000000e+00> : vector<16xf32>
    %63 = vector.multi_reduction <add>, %62, %cst_26 [1] : vector<16x128xf32> to vector<16xf32>
    %64 = vector.shape_cast %63 : vector<16xf32> to vector<16x1xf32>
    %65 = vector.extract_strided_slice %16 {offsets = [0, 8], sizes = [16, 4], strides = [1, 1]} : vector<16x16xf32> to vector<16x4xf32>
    %66 = arith.mulf %4, %65 : vector<16x4xf32>
    %cst_27 = arith.constant dense<0.000000e+00> : vector<16xf32>
    %67 = vector.multi_reduction <add>, %66, %cst_27 [1] : vector<16x4xf32> to vector<16xf32>
    %68 = vector.shape_cast %67 : vector<16xf32> to vector<16x1xf32>
    %69 = vector.extract_strided_slice %13 {offsets = [0, 2], sizes = [16, 1], strides = [1, 1]} : vector<16x4xf32> to vector<16x1xf32>
    %70 = arith.addf %7, %68 : vector<16x1xf32>
    %cst_28 = arith.constant 2.000000e+00 : f32
    %71 = vector.broadcast %cst_28 : f32 to vector<16x1xf32>
    %72 = arith.mulf %71, %64 : vector<16x1xf32>
    %73 = arith.subf %70, %72 : vector<16x1xf32>
    %cst_29 = arith.constant -7.812500e-03 : f32
    %74 = vector.broadcast %cst_29 : f32 to vector<16x1xf32>
    %75 = arith.mulf %74, %73 : vector<16x1xf32>
    %76 = math.exp %75 : vector<16x1xf32>
    %77 = arith.mulf %69, %76 : vector<16x1xf32>
    %78 = arith.addf %57, %77 : vector<16x1xf32>
    %79 = vector.broadcast %77 : vector<16x1xf32> to vector<16x128xf32>
    %80 = arith.mulf %79, %61 : vector<16x128xf32>
    %81 = arith.addf %60, %80 : vector<16x128xf32>
    %82 = vector.extract_strided_slice %10 {offsets = [0, 384], sizes = [16, 128], strides = [1, 1]} : vector<16x512xf32> to vector<16x128xf32>
    %83 = arith.mulf %3, %82 : vector<16x128xf32>
    %cst_30 = arith.constant dense<0.000000e+00> : vector<16xf32>
    %84 = vector.multi_reduction <add>, %83, %cst_30 [1] : vector<16x128xf32> to vector<16xf32>
    %85 = vector.shape_cast %84 : vector<16xf32> to vector<16x1xf32>
    %86 = vector.extract_strided_slice %16 {offsets = [0, 12], sizes = [16, 4], strides = [1, 1]} : vector<16x16xf32> to vector<16x4xf32>
    %87 = arith.mulf %4, %86 : vector<16x4xf32>
    %cst_31 = arith.constant dense<0.000000e+00> : vector<16xf32>
    %88 = vector.multi_reduction <add>, %87, %cst_31 [1] : vector<16x4xf32> to vector<16xf32>
    %89 = vector.shape_cast %88 : vector<16xf32> to vector<16x1xf32>
    %90 = vector.extract_strided_slice %13 {offsets = [0, 3], sizes = [16, 1], strides = [1, 1]} : vector<16x4xf32> to vector<16x1xf32>
    %91 = arith.addf %7, %89 : vector<16x1xf32>
    %cst_32 = arith.constant 2.000000e+00 : f32
    %92 = vector.broadcast %cst_32 : f32 to vector<16x1xf32>
    %93 = arith.mulf %92, %85 : vector<16x1xf32>
    %94 = arith.subf %91, %93 : vector<16x1xf32>
    %cst_33 = arith.constant -7.812500e-03 : f32
    %95 = vector.broadcast %cst_33 : f32 to vector<16x1xf32>
    %96 = arith.mulf %95, %94 : vector<16x1xf32>
    %97 = math.exp %96 : vector<16x1xf32>
    %98 = arith.mulf %90, %97 : vector<16x1xf32>
    %99 = arith.addf %78, %98 : vector<16x1xf32>
    %100 = vector.broadcast %98 : vector<16x1xf32> to vector<16x128xf32>
    %101 = arith.mulf %100, %82 : vector<16x128xf32>
    %102 = arith.addf %81, %101 : vector<16x128xf32>
    %c0_34 = arith.constant 0 : index
    %c0_35 = arith.constant 0 : index
    %103 = vector.load %arg8[%c0_34, %c0_35] : memref<16x128xf32, #tpu.memory_space<vmem>>, vector<16x128xf32>
    %104 = arith.addf %103, %102 : vector<16x128xf32>
    %c0_36 = arith.constant 0 : index
    %c0_37 = arith.constant 0 : index
    %105 = vector.load %arg8[%c0_36, %c0_37] : memref<16x128xf32, #tpu.memory_space<vmem>>, vector<16x128xf32>
    tpu.vector_store %arg8[%c0_36, %c0_37], %104 {strides = array<i32>} : memref<16x128xf32, #tpu.memory_space<vmem>>, vector<16x128xf32>,
    %c0_38 = arith.constant 0 : index
    %c0_39 = arith.constant 0 : index
    %106 = vector.load %arg9[%c0_38, %c0_39] : memref<16x1xf32, #tpu.memory_space<vmem>>, vector<16x1xf32>
    %107 = arith.addf %106, %99 : vector<16x1xf32>
    %c0_40 = arith.constant 0 : index
    %c0_41 = arith.constant 0 : index
    %108 = vector.load %arg9[%c0_40, %c0_41] : memref<16x1xf32, #tpu.memory_space<vmem>>, vector<16x1xf32>
    tpu.vector_store %arg9[%c0_40, %c0_41], %107 {strides = array<i32>} : memref<16x1xf32, #tpu.memory_space<vmem>>, vector<16x1xf32>,
    %c0_i32_42 = arith.constant 0 : i32
    %109 = arith.cmpi eq, %arg1, %c0_i32_42 : i32
    %110 = arith.extui %109 : i1 to i32
    %c0_i32_43 = arith.constant 0 : i32
    %111 = arith.cmpi ne, %110, %c0_i32_43 : i32
    scf.if %111 {
      %c0_44 = arith.constant 0 : index
      %c0_45 = arith.constant 0 : index
      %112 = vector.load %arg9[%c0_44, %c0_45] : memref<16x1xf32, #tpu.memory_space<vmem>>, vector<16x1xf32>
      %113 = vector.broadcast %112 : vector<16x1xf32> to vector<16x128xf32>
      %114 = arith.mulf %113, %3 : vector<16x128xf32>
      %c0_46 = arith.constant 0 : index
      %c0_47 = arith.constant 0 : index
      %115 = vector.load %arg8[%c0_46, %c0_47] : memref<16x128xf32, #tpu.memory_space<vmem>>, vector<16x128xf32>
      %116 = arith.subf %114, %115 : vector<16x128xf32>
      %117 = arith.mulf %116, %116 : vector<16x128xf32>
      %cst_48 = arith.constant dense<0.000000e+00> : vector<16xf32>
      %118 = vector.multi_reduction <add>, %117, %cst_48 [1] : vector<16x128xf32> to vector<16xf32>
      %119 = vector.shape_cast %118 : vector<16xf32> to vector<16x1xf32>
      %cst_49 = arith.constant 1.000000e-30 : f32
      %120 = vector.broadcast %cst_49 : f32 to vector<16x1xf32>
      %121 = arith.maximumf %119, %120 : vector<16x1xf32>
      %122 = math.rsqrt %121 : vector<16x1xf32>
      %cst_50 = arith.constant 0.000000e+00 : f32
      %123 = vector.broadcast %cst_50 : f32 to vector<16x128xf32>
      %124 = arith.subf %123, %116 : vector<16x128xf32>
      %125 = vector.broadcast %122 : vector<16x1xf32> to vector<16x128xf32>
      %126 = arith.mulf %124, %125 : vector<16x128xf32>
      %c0_51 = arith.constant 0 : index
      %c0_52 = arith.constant 0 : index
      %127 = vector.load %arg7[%c0_51, %c0_52] : memref<16x128xf32, #tpu.memory_space<vmem>>, vector<16x128xf32>
      tpu.vector_store %arg7[%c0_51, %c0_52], %126 {strides = array<i32>} : memref<16x128xf32, #tpu.memory_space<vmem>>, vector<16x128xf32>,
    } else {
    }
    return
  }
  func.func @transform_0(%arg0: i32, %arg1: i32) -> (i32, i32) {
    %c0_i32 = arith.constant 0 : i32
    %c0_i32_0 = arith.constant 0 : i32
    return %arg0, %c0_i32 : i32, i32
  }
  func.func @transform_1(%arg0: i32, %arg1: i32) -> (i32, i32) {
    %c0_i32 = arith.constant 0 : i32
    %c0_i32_0 = arith.constant 0 : i32
    return %arg0, %c0_i32 : i32, i32
  }
  func.func @transform_2(%arg0: i32, %arg1: i32) -> (i32, i32, i32) {
    %c0_i32 = arith.constant 0 : i32
    %c0_i32_0 = arith.constant 0 : i32
    %c0_i32_1 = arith.constant 0 : i32
    return %arg1, %c0_i32, %c0_i32_0 : i32, i32, i32
  }
  func.func @transform_3(%arg0: i32, %arg1: i32) -> (i32, i32, i32) {
    %c0_i32 = arith.constant 0 : i32
    %c0_i32_0 = arith.constant 0 : i32
    %c0_i32_1 = arith.constant 0 : i32
    return %arg1, %c0_i32, %c0_i32_0 : i32, i32, i32
  }
  func.func @transform_4(%arg0: i32, %arg1: i32) -> (i32, i32, i32) {
    %c0_i32 = arith.constant 0 : i32
    %c0_i32_0 = arith.constant 0 : i32
    %c0_i32_1 = arith.constant 0 : i32
    return %arg1, %c0_i32, %c0_i32_0 : i32, i32, i32
  }
  func.func @transform_5(%arg0: i32, %arg1: i32) -> (i32, i32) {
    %c0_i32 = arith.constant 0 : i32
    %c0_i32_0 = arith.constant 0 : i32
    return %arg0, %c0_i32 : i32, i32
  }
}

</mosaic_0001>

<bundles_post_ra>
// kernel: tpu_custom_call.1
= control target key start
LH: loop header
LB: loop body
LE: loop exit
PB: predicated region body
PF: predicated region fallthrough
CT: control target
= control target key end

     0   :  { %10 = vsyncpa [#allocation5], 0  ;;  %s903_s0 = inlined_call_operand.vmem [shape: f32[16,4], index: 0, kind: input, shape index: {}]   ;;  %s904_s1 = inlined_call_operand.vmem [shape: f32[16,128], index: 1, kind: input, shape index: {}]   ;;  %s905_s2 = inlined_call_operand.hbm [shape: f32[1,4,512], index: 2, kind: input, shape index: {}]   ;;  %s906_s3 = inlined_call_operand.vmem [shape: f32[1,4,4], index: 3, kind: input, shape index: {}]   ;;  %s907_s4 = inlined_call_operand.hbm [shape: f32[1,4,16], index: 4, kind: input, shape index: {}]   ;;  %s908_s5 = inlined_call_operand.hbm [shape: f32[16,128], index: 5, kind: output, shape index: {}]  }
   0x1   :  { %11 = vsyncpa [#allocation8], 0 }
   0x2   :  { %12 = vsyncpa [#allocation6], 0  ;;  %s22_s20 = sshll.u32 %s905_s2, 4  ;;  %s688_s21 = smov [#allocation4]   ;;  %s23_s20 = int_to_ptr.hbm [resolvable:$true] %s22_s20 }
   0x3   :  { %s24_s22 = sshll.u32 %s688_s21, 4  ;;  %s35_s25 = sshll.u32 %s907_s4, 4  ;;  %s25_s22 = int_to_ptr.vmem [resolvable:$true] %s24_s22  ;;  %s36_s25 = int_to_ptr.hbm [resolvable:$true] %s35_s25 }
   0x4   :  { %27 = dma.hbm_to_vmem [thread:$0]  %s23_s20, 256, %s25_s22, [#allocation5]  }
   0x5   :  { %s689_s26 = smov [#allocation7]  }
   0x6   :  { %s37_s27 = sshll.u32 %s689_s26, 4  ;;  %s38_s27 = int_to_ptr.vmem [resolvable:$true] %s37_s27 }
   0x7   :  { %40 = dma.hbm_to_vmem [thread:$0]  %s36_s25, 64, %s38_s27, [#allocation8]  }
   0x8   :  { %682 = dma.done.wait [#allocation5], 256  }
   0x9   :  { %683 = vsyncadd [#allocation5], 4294967040 }
   0xa   :  { %684 = dma.done.wait [#allocation8], 64  }
   0xb   :  { %685 = vsyncadd [#allocation8], 4294967232  ;;  %v68_v0 = vld [vmem:[#allocation4] sm:$0xff]  ;;  %v69_v1 = vld [vmem:[#allocation4 + $0x8] sm:$0xff]  ;;  %vm86_vm0 = vcmask 1043456   ;;  %vm79_vm1 = vcmask 31744  }
   0xc   :  { %72 = vst [vmem:[#allocation1] ss:$2 sm:$0xff] %v68_v0  ;;  %v743_v2 = vld [vmem:[%s904_s1 + $0x8] sm:$0xff]  ;;  %v750_v4 = vld [vmem:[%s904_s1] sm:$0xff]  ;;  %s691_s8 = smov 124   ;;  %s692_s9 = smov 116  }
   0xd   :  { %74 = vst [vmem:[#allocation1 + $0x10] ss:$2 sm:$0xff] %v69_v1  ;;  %v63_v3 = vmul.f32 %v743_v2, %v743_v2  ;;  %v62_v5 = vmul.f32 %v750_v4, %v750_v4  ;;  %v757_v6 = vld [vmem:[%s903_s0] sm:$0xff]  ;;  %v214_v7 = vld [vmem:[#allocation7] sm:$0xf]  ;;  %v693_v54 = vmov 0  }
   0xe   :  { %v769_v11 = vld [vmem:[%s903_s0 + $0x8] sm:$0xff]  ;;  %s690_s0 = smov 120   ;;  %v187_v18 = vld [vmem:[%s906_s3] sm:$0xf]  ;;  %579 = vset.pattern.permute.xlu2 %v693_v54  ;;  %580 = vset.pattern.permute.xlu0 %v693_v54  ;;  %s695_s3 = smov 127   ;;  %vm55_vm2 = vcmask 7168  }
   0xf   :  { %66 = vadd.xlane.f32.xlu1 %v63_v3  ;;  %64 = vadd.xlane.f32.xlu0 %v62_v5  ;;  %s697_s12 = smov 126   ;;  %s698_s13 = smov 125  }
  0x10   :  { %s701_s14 = smov [#allocation9]   ;;  %s529_s18 = sshll.u32 %s908_s5, 4  ;;  %s530_s18 = int_to_ptr.hbm [resolvable:$true] %s529_s18 }
  0x11   :  { %s527_s15 = sshll.u32 %s701_s14, 4  ;;  %s702_s19 = smov 128   ;;  %s528_s15 = int_to_ptr.vmem [resolvable:$true] %s527_s15 }
  0x12   :  { %s703_s20 = smov 8  }
  0x13   :  { %v75_v8 = vld.sshfl [vmem:[#allocation1] sm:$0xff pattern:$0x75316420]  ;;  %v76_v9 = vld.sshfl [vmem:[#allocation1 + $0x8] sm:$0xff pattern:$0x75316420] }
  0x14   :  { %543 = vmatpush.msk.msra.mxu0 %vm86_vm0, %v75_v8  ;;  %546 = vmatpush.msk.msra.mxu1 %vm86_vm0, %v76_v9  ;;  %v78_v10 = vld.sshfl [vmem:[#allocation1 + $0x18] sm:$0xff pattern:$0x75316420]  ;;  %v77_v12 = vld.sshfl [vmem:[#allocation1 + $0x10] sm:$0xff pattern:$0x75316420] }
  0x15   :  { %544 = vmatmul.msk.f32.vlgmr.msra.gmra.mxu0 %vm79_vm1, %v757_v6  ;;  %547 = vmatmul.msk.f32.vlgmr.msra.gmra.mxu1 %vm79_vm1, %v757_v6 }
  0x16   :  { %558 = vmatpush.msk.msrb.mxu1 %vm86_vm0, %v214_v7  ;;  %562 = vmatpush.msk.msra.mxu3 %vm86_vm0, %v76_v9 }
  0x17   :  { %548 = vmatmul.msk.f32.vlgmr.msra.gmra.mxu3 %vm79_vm1, %v769_v11  ;;  %561 = vmatpush.msk.msra.mxu2 %vm86_vm0, %v75_v8 }
  0x18   :  { %552 = vmatpush.msk.msrb.mxu3 %vm86_vm0, %v78_v10  ;;  %545 = vmatmul.msk.f32.vlgmr.msra.gmra.mxu2 %vm79_vm1, %v769_v11 }
  0x19   :  { %549 = vmatpush.msk.msrb.mxu2 %vm86_vm0, %v77_v12  ;;  %555 = vmatpush.msk.msrb.mxu0 %vm86_vm0, %v187_v18 }
  0x1d   :  { %559 = vmatmul.msk.f32.vlgmr.msrb.gmra.mxu1 %vm79_vm1, %v757_v6  ;;  %556 = vmatmul.msk.f32.vlgmr.msrb.gmra.mxu0 %vm79_vm1, %v757_v6 }
  0x1f   :  { %553 = vmatmul.msk.f32.vlgmr.msrb.gmra.mxu3 %vm79_vm1, %v757_v6 }
  0x20   :  { %550 = vmatmul.msk.f32.vlgmr.msrb.gmra.mxu2 %vm79_vm1, %v757_v6 }
  0x25   :  { %560 = vmatmul.msk.f32.gmra.mxu1 %vm79_vm1, %v769_v11  ;;  %557 = vmatmul.msk.f32.gmra.mxu0 %vm79_vm1, %v769_v11 }
  0x27   :  { %554 = vmatmul.msk.f32.gmra.mxu3 %vm79_vm1, %v769_v11 }
  0x28   :  { %551 = vmatmul.msk.f32.gmra.mxu2 %vm79_vm1, %v769_v11 }
  0x82   :  { %v831_v34 = vpop.xlane.xlu0 %64  ;;  %v833_v35 = vpop.xlane.xlu1 %66 }
  0x92   :  { %v791_v13 = vpop.f32.mrf.mxu0  ;;  %v793_v14 = vpop.f32.mrf.mxu1 }
  0x93   :  { %v241_v15 = vmul.f32 %v791_v13, %v750_v4  ;;  %v285_v30 = vmul.f32 %v793_v14, %v750_v4 }
  0x95   :  { %243 = vadd.xlane.f32.xlu2 %v241_v15 }
  0x9a   :  { %v235_v16 = vpop.f32.mrf.mxu1  ;;  %v805_v19 = vpop.f32.mrf.mxu3 }
  0x9b   :  { %349 = vrot.lane.b32.xlu1 %v235_v16, %s690_s0  ;;  %293 = vrot.lane.b32.xlu0 %v235_v16, %s691_s8  ;;  %v247_v21 = vmul.f32 %v235_v16, %v757_v6  ;;  %v813_v24 = vpop.f32.mrf.mxu2  ;;  %v286_v29 = vmul.f32 %v805_v19, %v743_v2  ;;  %v853_v5 = vpop.f32.mrf.mxu0 }
  0x9c   :  { %v242_v26 = vmul.f32 %v813_v24, %v743_v2 }
  0x9d   :  { %v249_v23 = vsel %vm79_vm1, %v247_v21, 0.0 }
  0xa2   :  { %v238_v17 = vpop.f32.mrf.mxu1  ;;  %v807_v20 = vpop.f32.mrf.mxu3 }
  0xa3   :  { %351 = vrot.lane.b32.xlu1 %v238_v17, %s690_s0  ;;  %295 = vrot.lane.b32.xlu0 %v238_v17, %s691_s8  ;;  %v399_v22 = vmul.f32 %v807_v20, %v750_v4  ;;  %v248_v25 = vmul.f32 %v238_v17, %v769_v11  ;;  %v819_v28 = vpop.f32.mrf.mxu2  ;;  %v859_v12 = vpop.f32.mrf.mxu0 }
  0xa4   :  { %v343_v33 = vmul.f32 %v819_v28, %v750_v4 }
  0xa5   :  { %v252_v27 = vsel %vm79_vm1, %v248_v25, 0.0 }
  0xaa   :  { %v839_v44 = vpop.f32.mrf.mxu3 }
  0xab   :  { %v825_v31 = vpop.f32.mrf.mxu2  ;;  %v400_v46 = vmul.f32 %v839_v44, %v743_v2 }
  0xac   :  { %v344_v32 = vmul.f32 %v825_v31, %v743_v2 }
  0xad   :  { %405 = vrot.lane.b32.xlu2 %v235_v16, %s692_s9 }
  0xcd   :  { %401 = vadd.xlane.f32.xlu1 %v399_v22  ;;  %250 = vadd.xlane.f32.xlu0 %v249_v23  ;;  %v694_v22 = vmov 1  }
  0xce   :  { %584 = vset.pattern.permute.xlu1 %v694_v22 }
  0xd5   :  { %253 = vadd.xlane.f32.xlu1 %v252_v27  ;;  %289 = vadd.xlane.f32.xlu0 %v286_v29 }
  0xd6   :  { %245 = vadd.xlane.f32.xlu2 %v242_v26 }
  0xdd   :  { %347 = vadd.xlane.f32.xlu1 %v344_v32  ;;  %345 = vadd.xlane.f32.xlu0 %v343_v33 }
  0xde   :  { %287 = vadd.xlane.f32.xlu2 %v285_v30 }
  0xf6   :  { %407 = vrot.lane.b32.xlu2 %v238_v17, %s692_s9 }
 0x108   :  { %v244_v39 = vpop.xlane.xlu2 %243 }
 0x109   :  { %v257_v57 = vmul.f32 2.0, %v244_v39 }
 0x10d   :  { %v350_v36 = vpop.permute.xlu1 %349  ;;  %v294_v37 = vpop.permute.xlu0 %293 }
 0x10e   :  { %v299_v38 = vmul.f32 %v294_v37, %v757_v6  ;;  %v355_v49 = vmul.f32 %v350_v36, %v757_v6 }
 0x110   :  { %v301_v40 = vsel %vm79_vm1, %v299_v38, 0.0  ;;  %v406_v45 = vpop.permute.xlu2 %405  ;;  %v357_v50 = vsel %vm79_vm1, %v355_v49, 0.0  ;;  %v696_v49 = vmov 2  }
 0x111   :  { %302 = vadd.xlane.f32.xlu1 %v301_v40  ;;  %v411_v47 = vmul.f32 %v406_v45, %v757_v6 }
 0x113   :  { %v413_v48 = vsel %vm79_vm1, %v411_v47, 0.0 }
 0x115   :  { %v352_v41 = vpop.permute.xlu1 %351  ;;  %v296_v51 = vpop.permute.xlu0 %295 }
 0x116   :  { %v356_v42 = vmul.f32 %v352_v41, %v769_v11  ;;  %v300_v52 = vmul.f32 %v296_v51, %v769_v11 }
 0x118   :  { %v360_v43 = vsel %vm79_vm1, %v356_v42, 0.0  ;;  %v304_v53 = vsel %vm79_vm1, %v300_v52, 0.0 }
 0x119   :  { %361 = vadd.xlane.f32.xlu0 %v360_v43 }
 0x11f   :  { %403 = vadd.xlane.f32.xlu2 %v400_v46 }
 0x121   :  { %414 = vadd.xlane.f32.xlu0 %v413_v48 }
 0x127   :  { %358 = vadd.xlane.f32.xlu2 %v357_v50 }
 0x12f   :  { %305 = vadd.xlane.f32.xlu2 %v304_v53 }
 0x140   :  { %v402_v55 = vpop.xlane.xlu1 %401  ;;  %v251_v56 = vpop.xlane.xlu0 %250 }
 0x141   :  { %v255_v58 = vadd.f32 %v251_v56, %v831_v34  ;;  %v421_v43 = vmul.f32 2.0, %v402_v55 }
 0x143   :  { %v259_v59 = vsub.f32 %v255_v58, %v257_v57 }
 0x145   :  { %v261_v60 = vmul.f32 -0.0078125, %v259_v59 }
 0x147   :  { %v263_v61 = vmul.f32 1.442695, %v261_v60 }
 0x148   :  { %v254_v62 = vpop.xlane.xlu1 %253  ;;  %v290_v25 = vpop.xlane.xlu0 %289 }
 0x149   :  { %590 = vpow2.f32 %v263_v61  ;;  %v256_v63 = vadd.f32 %v254_v62, %v833_v35  ;;  %v246_v0 = vpop.xlane.xlu2 %245  ;;  %v310_v57 = vmul.f32 2.0, %v290_v25 }
 0x14a   :  { %v258_v1 = vmul.f32 2.0, %v246_v0 }
 0x14c   :  { %v260_v3 = vsub.f32 %v256_v63, %v258_v1 }
 0x14e   :  { %v262_v6 = vmul.f32 -0.0078125, %v260_v3 }
 0x14f   :  { %v591_v7 = vpop.eup %590 }
 0x150   :  { %v265_v8 = vmul.f32 1.442695, %v262_v6  ;;  %v856_v9 = vmul.f32 %v591_v7, %v853_v5  ;;  %v348_v23 = vpop.xlane.xlu1 %347  ;;  %v346_v26 = vpop.xlane.xlu0 %345 }
 0x151   :  { %v288_v10 = vpop.xlane.xlu2 %287  ;;  %v365_v45 = vmul.f32 2.0, %v346_v26  ;;  %v366_v58 = vmul.f32 2.0, %v348_v23 }
 0x152   :  { %592 = vpow2.f32 %v265_v8  ;;  %273 = vperm.xlu2 %579, %v856_v9   ;;  %v309_v29 = vmul.f32 2.0, %v288_v10 }
 0x158   :  { %v593_v15 = vpop.eup %592 }
 0x159   :  { %v862_v16 = vmul.f32 %v593_v15, %v859_v12  ;;  %v408_v17 = vpop.permute.xlu2 %407 }
 0x15a   :  { %v412_v18 = vmul.f32 %v408_v17, %v769_v11  ;;  %582 = vset.pattern.permute.xlu2 %v696_v49 }
 0x15b   :  { %278 = vperm.xlu0 %580, %v862_v16  }
 0x15c   :  { %v416_v21 = vsel %vm79_vm1, %v412_v18, 0.0  ;;  %v699_v18 = vmov 3  }
 0x15d   :  { %417 = vadd.xlane.f32.xlu1 %v416_v21 }
 0x163   :  { %581 = vset.pattern.permute.xlu0 %v694_v22 }
 0x184   :  { %v303_v27 = vpop.xlane.xlu1 %302 }
 0x185   :  { %v307_v30 = vadd.f32 %v303_v27, %v831_v34 }
 0x187   :  { %v311_v32 = vsub.f32 %v307_v30, %v309_v29  ;;  %v700_v30 = vmov 0.0  }
 0x188   :  { %56 = vst.msk [vmem:[#allocation3] sm:$0xff] %vm55_vm2, %v700_v30 }
 0x189   :  { %v313_v33 = vmul.f32 -0.0078125, %v311_v32  ;;  %57 = vst.msk [vmem:[#allocation3 + $0x8] sm:$0xff] %vm55_vm2, %v700_v30 }
 0x18b   :  { %v315_v36 = vmul.f32 1.442695, %v313_v33 }
 0x18c   :  { %v362_v37 = vpop.xlane.xlu0 %361 }
 0x18d   :  { %594 = vpow2.f32 %v315_v36  ;;  %v364_v51 = vadd.f32 %v362_v37, %v833_v35 }
 0x18f   :  { %v368_v60 = vsub.f32 %v364_v51, %v366_v58 }
 0x191   :  { %v370_v63 = vmul.f32 -0.0078125, %v368_v60 }
 0x192   :  { %v404_v11 = vpop.xlane.xlu2 %403 }
 0x193   :  { %v595_v38 = vpop.eup %594  ;;  %v373_v3 = vmul.f32 1.442695, %v370_v63  ;;  %v422_v22 = vmul.f32 2.0, %v404_v11  ;;  %v461_v11 = vld [vmem:[#allocation3] sm:$0xff] }
 0x194   :  { %v319_v39 = vmul.f32 %v595_v38, %v853_v5  ;;  %v415_v40 = vpop.xlane.xlu0 %414 }
 0x195   :  { %v419_v41 = vadd.f32 %v415_v40, %v831_v34 }
 0x196   :  { %332 = vperm.xlu0 %581, %v319_v39   ;;  %323 = vrot.lane.b32.xlu1 %v319_v39, %s695_s3 }
 0x197   :  { %v423_v47 = vsub.f32 %v419_v41, %v421_v43 }
 0x199   :  { %v425_v52 = vmul.f32 -0.0078125, %v423_v47 }
 0x19a   :  { %v359_v42 = vpop.xlane.xlu2 %358 }
 0x19b   :  { %v363_v46 = vadd.f32 %v359_v42, %v831_v34  ;;  %v427_v55 = vmul.f32 1.442695, %v425_v52 }
 0x19d   :  { %v367_v48 = vsub.f32 %v363_v46, %v365_v45  ;;  %v462_v46 = vld [vmem:[#allocation3 + $0x8] sm:$0xff] }
 0x19e   :  { %586 = vset.pattern.permute.xlu0 %v699_v18 }
 0x19f   :  { %v369_v50 = vmul.f32 -0.0078125, %v367_v48 }
 0x1a1   :  { %v371_v53 = vmul.f32 1.442695, %v369_v50 }
 0x1a2   :  { %v306_v56 = vpop.xlane.xlu2 %305 }
 0x1a3   :  { %596 = vpow2.f32 %v371_v53  ;;  %v308_v59 = vadd.f32 %v306_v56, %v833_v35 }
 0x1a4   :  { %598 = vpow2.f32 %v427_v55 }
 0x1a5   :  { %v312_v61 = vsub.f32 %v308_v59, %v310_v57 }
 0x1a7   :  { %v314_v62 = vmul.f32 -0.0078125, %v312_v61 }
 0x1a9   :  { %v597_v34 = vpop.eup %596  ;;  %v317_v0 = vmul.f32 1.442695, %v314_v62 }
 0x1aa   :  { %v375_v1 = vmul.f32 %v597_v34, %v853_v5  ;;  %v599_v6 = vpop.eup %598 }
 0x1ab   :  { %600 = vpow2.f32 %v317_v0  ;;  %v431_v10 = vmul.f32 %v599_v6, %v853_v5 }
 0x1ac   :  { %379 = vrot.lane.b32.xlu1 %v375_v1, %s697_s12  ;;  %602 = vpow2.f32 %v373_v3  ;;  %v274_v33 = vpop.permute.xlu2 %273 }
 0x1ad   :  { %v281_v55 = vmul.f32 %v274_v33, %v791_v13 }
 0x1b1   :  { %v601_v7 = vpop.eup %600 }
 0x1b2   :  { %v320_v8 = vmul.f32 %v601_v7, %v859_v12  ;;  %v603_v15 = vpop.eup %602 }
 0x1b3   :  { %v376_v17 = vmul.f32 %v603_v15, %v859_v12 }
 0x1b4   :  { %325 = vrot.lane.b32.xlu2 %v320_v8, %s695_s3  ;;  %435 = vrot.lane.b32.xlu1 %v431_v10, %s698_s13 }
 0x1bc   :  { %381 = vrot.lane.b32.xlu2 %v376_v17, %s697_s12  ;;  %336 = vperm.xlu1 %584, %v320_v8  }
 0x1c4   :  { %585 = vset.pattern.permute.xlu1 %v696_v49 }
 0x1c5   :  { %392 = vperm.xlu1 %585, %v376_v17  }
 0x1cd   :  { %587 = vset.pattern.permute.xlu1 %v693_v54  ;;  %v279_v49 = vpop.permute.xlu0 %278 }
 0x1d0   :  { %v418_v21 = vpop.xlane.xlu1 %417 }
 0x1d1   :  { %v420_v23 = vadd.f32 %v418_v21, %v833_v35 }
 0x1d3   :  { %v424_v5 = vsub.f32 %v420_v23, %v422_v22 }
 0x1d5   :  { %v426_v25 = vmul.f32 -0.0078125, %v424_v5 }
 0x1d7   :  { %v429_v26 = vmul.f32 1.442695, %v426_v25 }
 0x1d9   :  { %604 = vpow2.f32 %v429_v26 }
 0x1df   :  { %v605_v27 = vpop.eup %604 }
 0x1e0   :  { %v432_v29 = vmul.f32 %v605_v27, %v859_v12 }
 0x1e2   :  { %448 = vperm.xlu0 %586, %v432_v29   ;;  %437 = vrot.lane.b32.xlu2 %v432_v29, %s698_s13 }
 0x1ea   :  { %388 = vperm.xlu2 %582, %v375_v1   ;;  %589 = vset.pattern.permute.xlu0 %v693_v54 }
 0x1f2   :  { %583 = vset.pattern.permute.xlu2 %v699_v18 }
 0x1f3   :  { %444 = vperm.xlu2 %583, %v431_v10  }
 0x1fb   :  { %588 = vset.pattern.permute.xlu2 %v693_v54 }
 0x208   :  { %v324_v35 = vpop.permute.xlu1 %323  ;;  %v333_v52 = vpop.permute.xlu0 %332 }
 0x209   :  { %v329_v12 = vadd.f32 %v324_v35, %v856_v9  ;;  %v339_v59 = vmul.f32 %v333_v52, %v793_v14 }
 0x20b   :  { %v341_v63 = vadd.f32 %v339_v59, %v281_v55 }
 0x20e   :  { %v326_v40 = vpop.permute.xlu2 %325 }
 0x20f   :  { %v330_v42 = vadd.f32 %v326_v40, %v862_v16  ;;  %v282_v16 = vmul.f32 %v279_v49, %v813_v24 }
 0x216   :  { %v382_v41 = vpop.permute.xlu2 %381 }
 0x217   :  { %v386_v43 = vadd.f32 %v382_v41, %v330_v42 }
 0x21e   :  { %v380_v32 = vpop.permute.xlu1 %379 }
 0x21f   :  { %v385_v36 = vadd.f32 %v380_v32, %v329_v12 }
 0x226   :  { %v436_v37 = vpop.permute.xlu1 %435 }
 0x227   :  { %v441_v38 = vadd.f32 %v436_v37, %v385_v36 }
 0x229   :  { %v463_v39 = vadd.f32 %v461_v11, %v441_v38 }
 0x22b   :  { %466 = vst.msk [vmem:[#allocation3] sm:$0xff] %vm55_vm2, %v463_v39 }
 0x22e   :  { %v337_v50 = vpop.permute.xlu1 %336 }
 0x22f   :  { %v340_v57 = vmul.f32 %v337_v50, %v805_v19 }
 0x231   :  { %v342_v61 = vadd.f32 %v340_v57, %v282_v16 }
 0x232   :  { %v471_v54 = vld [vmem:[#allocation3] sm:$0xff] }
 0x233   :  { %475 = vperm.xlu1 %587, %v471_v54  }
 0x237   :  { %v393_v53 = vpop.permute.xlu1 %392 }
 0x238   :  { %v396_v60 = vmul.f32 %v393_v53, %v825_v31 }
 0x23a   :  { %v398_v0 = vadd.f32 %v396_v60, %v342_v61 }
 0x23c   :  { %v438_v45 = vpop.permute.xlu2 %437 }
 0x23d   :  { %v442_v47 = vadd.f32 %v438_v45, %v386_v43 }
 0x23f   :  { %v464_v48 = vadd.f32 %v462_v46, %v442_v47 }
 0x241   :  { %467 = vst.msk [vmem:[#allocation3 + $0x8] sm:$0xff] %vm55_vm2, %v464_v48 }
 0x244   :  { %v389_v51 = vpop.permute.xlu2 %388 }
 0x245   :  { %v395_v62 = vmul.f32 %v389_v51, %v819_v28 }
 0x247   :  { %v397_v19 = vadd.f32 %v395_v62, %v341_v63 }
 0x248   :  { %v472_v9 = vld [vmem:[#allocation3 + $0x8] sm:$0xff] }
 0x249   :  { %480 = vperm.xlu2 %588, %v472_v9  }
 0x24d   :  { %v445_v56 = vpop.permute.xlu2 %444 }
 0x24e   :  { %v451_v1 = vmul.f32 %v445_v56, %v807_v20 }
 0x250   :  { %v453_v14 = vadd.f32 %v451_v1, %v397_v19 }
 0x254   :  { %v449_v58 = vpop.permute.xlu0 %448 }
 0x255   :  { %v452_v34 = vmul.f32 %v449_v58, %v839_v44 }
 0x257   :  { %v454_v6 = vadd.f32 %v452_v34, %v398_v0 }
 0x2a3   :  { %v481_v3 = vpop.permute.xlu2 %480 }
 0x2a4   :  { %v484_v24 = vmul.f32 %v481_v3, %v743_v2 }
 0x2a5   :  { %v476_v7 = vpop.permute.xlu1 %475 }
 0x2a6   :  { %v488_v8 = vsub.f32 %v484_v24, %v454_v6  ;;  %v483_v31 = vmul.f32 %v476_v7, %v750_v4 }
 0x2a8   :  { %v487_v13 = vsub.f32 %v483_v31, %v453_v14  ;;  %v490_v10 = vmul.f32 %v488_v8, %v488_v8  ;;  %v518_v30 = vsub.f32 0.0, %v488_v8 }
 0x2aa   :  { %493 = vadd.xlane.f32.xlu2 %v490_v10  ;;  %v489_v28 = vmul.f32 %v487_v13, %v487_v13  ;;  %v517_v33 = vsub.f32 0.0, %v487_v13 }
 0x2ac   :  { %491 = vadd.xlane.f32.xlu1 %v489_v28 }
 0x31d   :  { %v494_v44 = vpop.xlane.xlu2 %493 }
 0x31e   :  { %v496_v15 = vmax.f32 %v494_v44, 1e-30 }
 0x31f   :  { %v492_v17 = vpop.xlane.xlu1 %491 }
 0x320   :  { %606 = vrsqrt.f32 %v496_v15  ;;  %v495_v20 = vmax.f32 %v492_v17, 1e-30  ;;  %vm513_vm4 = vweird.f32 %v496_v15 }
 0x322   :  { %608 = vrsqrt.f32 %v495_v20  ;;  %vm503_vm7 = vweird.f32 %v495_v20 }
 0x326   :  { %v607_v18 = vpop.eup %606 }
 0x327   :  { %v508_v21 = vmul.f32 %v607_v18, %v496_v15  ;;  %vm514_vm3 = vweird.f32 %v607_v18 }
 0x328   :  { %v609_v22 = vpop.eup %608  ;;  %vm515_vm6 = vmor %vm513_vm4, %vm514_vm3 }
 0x329   :  { %v509_v2 = vmul.f32 %v607_v18, %v508_v21  ;;  %v498_v23 = vmul.f32 %v609_v22, %v495_v20  ;;  %vm504_vm5 = vweird.f32 %v609_v22 }
 0x32a   :  { %vm505_vm8 = vmor %vm503_vm7, %vm504_vm5 }
 0x32b   :  { %v510_v5 = vmul.f32 0.5, %v509_v2  ;;  %v499_v25 = vmul.f32 %v609_v22, %v498_v23 }
 0x32d   :  { %v511_v26 = vsub.f32 1.5, %v510_v5  ;;  %v500_v4 = vmul.f32 0.5, %v499_v25 }
 0x32f   :  { %v512_v27 = vmul.f32 %v607_v18, %v511_v26  ;;  %v501_v29 = vsub.f32 1.5, %v500_v4 }
 0x331   :  { %v516_v35 = vsel %vm515_vm6, %v607_v18, %v512_v27  ;;  %v502_v32 = vmul.f32 %v609_v22, %v501_v29 }
 0x332   :  { %v520_v12 = vmul.f32 %v518_v30, %v516_v35 }
 0x333   :  { %v506_v36 = vsel %vm505_vm8, %v609_v22, %v502_v32 }
 0x334   :  { %522 = vst [vmem:[#allocation9 + $0x8] sm:$0xff] %v520_v12  ;;  %v519_v37 = vmul.f32 %v517_v33, %v506_v36 }
 0x336   :  { %521 = vst [vmem:[#allocation9] sm:$0xff] %v519_v37 }
 0x337   :  { %535 = dma.vmem_to_hbm [thread:$0]  %s528_s15, 256, %s530_s18, [#allocation6], %s702_s19, %s702_s19, %s703_s20  }
 0x338   :  { %686 = dma.done.wait [#allocation6], 256  }
 0x339   :  { %687 = vsyncadd [#allocation6], 4294967040 }
 0x33a   :  { %540 = vsyncpa [#allocation5], 1 }
 0x33b   :  { %541 = vsyncpa [#allocation8], 1 }
 0x33c   :  { %542 = vsyncpa [#allocation6], 1 }

</bundles_post_ra>
